<compile_context>
chip_gen: v6e
topology: v6e:2x2x1
jax: 0.10.0
libtpu: 0.0.40
codegen_flags: <defaults>
</compile_context>

<pallas_src>
import jax
import jax.numpy as jnp
from jax.experimental import pallas as pl
from jax.experimental.pallas import tpu as pltpu


# Below this many total input bytes a pallas_call is pure launch overhead
# (~0.35 us/grid step + custom-call cost); plain XLA is faster.
_SMALL_INPUT_FALLBACK_BYTES = 256 * 1024

# Per-grid-step input-tile budget (summed over all fused tensors, single
# buffer).  With 2x double buffering + f32 accumulators this stays comfortably
# inside the default scoped-VMEM limit and far under v7x's 64 MiB physical.
_TILE_BUDGET_BYTES = 8 * 1024 * 1024


def _make_gap_kernel(num_inputs, inv_s):
    """Kernel pooling `num_inputs` same-shaped (bn, bc, sk) tiles -> (bn, bc)."""

    def kernel(*refs):
        in_refs = refs[:num_inputs]
        out_refs = refs[num_inputs:2 * num_inputs]
        acc_refs = refs[2 * num_inputs:]

        ks = pl.program_id(2)

        @pl.when(ks == 0)
        def _init():
            for acc in acc_refs:
                acc[...] = jnp.zeros_like(acc)

        # f32 accumulation (required on v5e: no bf16 VPU; also keeps precision
        # for bf16 inputs / large spatial maps).
        for x_ref, acc in zip(in_refs, acc_refs):
            acc[...] += jnp.sum(x_ref[...].astype(jnp.float32), axis=-1)

        @pl.when(ks == pl.num_programs(2) - 1)
        def _finalize():
            for acc, o_ref in zip(acc_refs, out_refs):
                o_ref[...] = (acc[...] * inv_s).astype(o_ref.dtype)

    return kernel


def _pick_tiles(n, c, s, itemsize, num_tensors):
    """Choose (bn, bc, sk) satisfying the (8, 128) block rules and VMEM budget."""
    budget = max(_TILE_BUDGET_BYTES // max(1, num_tensors), 128 * 1024)

    def tile_bytes(bn, bc, sk):
        return bn * bc * sk * itemsize

    bn, bc, sk = n, c, s

    # 1) Tile the batch axis (output sublane axis -> multiple of 8, or full N).
    if tile_bytes(bn, bc, sk) > budget and n > 8:
        bn = 8
        while bn * 2 <= n and tile_bytes(bn * 2, bc, sk) <= budget:
            bn *= 2

    # 2) Tile the channel axis (output lane axis -> multiple of 128, or full C).
    if tile_bytes(bn, bc, sk) > budget and c > 128:
        bc = 128
        while bc * 2 <= c and tile_bytes(bn, bc * 2, sk) <= budget:
            bc *= 2

    # 3) Chunk the spatial reduction axis only when it splits exactly into
    #    lane-aligned chunks (partial reduction chunks would sum padding).
    if tile_bytes(bn, bc, sk) > budget:
        for cand in (8192, 4096, 2048, 1024, 512, 256, 128):
            if s % cand == 0 and tile_bytes(bn, bc, cand) <= budget:
                sk = cand
                break

    return bn, bc, sk


def global_avg_pool_multi(xs, *, force_pallas=False):
    """Global-average-pool a list of SAME-shaped (N, C, *spatial) arrays.

    Returns a list of (N, C) arrays.  All tensors are processed in a single
    pallas_call (one launch, no HBM concat).
    """
    xs = list(xs)
    assert len(xs) >= 1
    shape, dtype = xs[0].shape, xs[0].dtype
    assert all(x.shape == shape and x.dtype == dtype for x in xs)
    assert len(shape) in (3, 4, 5), "expect NC + 1/2/3 spatial dims"

    n, c = shape[0], shape[1]
    s = 1
    for d in shape[2:]:
        s *= d
    itemsize = jnp.dtype(dtype).itemsize

    total_bytes = len(xs) * n * c * s * itemsize
    if total_bytes < _SMALL_INPUT_FALLBACK_BYTES and not force_pallas:
        # Too small for a kernel launch to pay off.
        axes = tuple(range(2, len(shape)))
        return [jnp.mean(x, axis=axes) for x in xs]

    # Contiguous NC(HW..) -> (N, C, S) is a free view; reduction stays in-kernel.
    xs2 = [jnp.reshape(x, (n, c, s)) for x in xs]

    bn, bc, sk = _pick_tiles(n, c, s, itemsize, len(xs))
    grid = (pl.cdiv(n, bn), pl.cdiv(c, bc), s // sk)

    in_spec = pl.BlockSpec((bn, bc, sk), lambda i, j, k: (i, j, k))
    out_spec = pl.BlockSpec((bn, bc), lambda i, j, k: (i, j))

    # 2x double-buffered inputs + f32 accumulators + double-buffered outputs.
    vmem_need = len(xs) * bn * bc * (2 * sk * itemsize + 4 + 2 * itemsize)
    vmem_limit = int(min(max(2 * vmem_need, 16 * 2**20), 48 * 2**20))

    cost = pl.CostEstimate(
        flops=len(xs) * n * c * s,
        transcendentals=0,
        bytes_accessed=len(xs) * (n * c * s * itemsize + n * c * itemsize),
    )

    outs = pl.pallas_call(
        _make_gap_kernel(len(xs), 1.0 / float(s)),
        out_shape=tuple(jax.ShapeDtypeStruct((n, c), dtype) for _ in xs),
        grid_spec=pltpu.PrefetchScalarGridSpec(
            num_scalar_prefetch=0,
            grid=grid,
            in_specs=[in_spec] * len(xs),
            out_specs=tuple(out_spec for _ in xs),
            scratch_shapes=[pltpu.VMEM((bn, bc), jnp.float32) for _ in xs],
        ),
        compiler_params=pltpu.CompilerParams(
            dimension_semantics=("parallel", "parallel", "arbitrary"),
            vmem_limit_bytes=vmem_limit,
        ),
        cost_estimate=cost,
    )(*xs2)

    if not isinstance(outs, (tuple, list)):
        outs = (outs,)
    return list(outs)


def _fd(inputs, *, force_pallas=False):
    """Mirror of GlobalAveragePoolingOurs.fd: tuple or single tensor."""
    if isinstance(inputs, (tuple, list)):
        return tuple(
            global_avg_pool_multi([x], force_pallas=force_pallas)[0] for x in inputs
        )
    else:
        return global_avg_pool_multi([inputs], force_pallas=force_pallas)[0]


def global_average_pooling_ours_forward(inputs, *, force_pallas=False):
    """Mirror of GlobalAveragePoolingOurs.forward (dim in {1,2,3}).

    inputs: (harris_loss, theta_loss, cos_loss, step, writer, ..., inputs_t, x)
    returns: (harris_loss, theta_loss, cos_loss, step, writer, outs_t, outs)
    """
    harris_loss = inputs[0]
    theta_loss = inputs[1]
    cos_loss = inputs[2]
    step = inputs[3]
    writer = inputs[4]  # pass-through object (tensorboard writer in torch)
    inputs_t = inputs[-2]
    x = inputs[-1]

    fuse = (
        not isinstance(x, (tuple, list))
        and not isinstance(inputs_t, (tuple, list))
        and x.shape == inputs_t.shape
        and x.dtype == inputs_t.dtype
    )
    if fuse:
        # One pallas_call for both tensors: halves launch overhead, no concat.
        outs_t, outs = global_avg_pool_multi([inputs_t, x], force_pallas=force_pallas)
    else:
        outs = _fd(x, force_pallas=force_pallas)
        outs_t = _fd(inputs_t, force_pallas=force_pallas)

    return (harris_loss, theta_loss, cos_loss, step, writer, outs_t, outs)


if __name__ == "__main__":
    key = jax.random.PRNGKey(0)
    k1, k2, k3 = jax.random.split(key, 3)

    # Small NCHW feature maps consistent with dim=2 (AdaptiveAvgPool2d).
    N, C, H, W = 2, 4, 16, 16
    x = jax.random.normal(k1, (N, C, H, W), dtype=jnp.float32)
    x_t = jax.random.normal(k2, (N, C, H, W), dtype=jnp.float32)

    harris_loss = jax.random.normal(k3, (), dtype=jnp.float32)
    theta_loss = jnp.float32(0.5)
    cos_loss = jnp.float32(0.25)
    step = 7  # python int, pass-through
    writer = None  # TODO(synk): tensorboard SummaryWriter has no JAX equivalent; passed through as-is.

    inputs = (harris_loss, theta_loss, cos_loss, step, writer, x_t, x)

    # force_pallas=True so the fused Pallas kernel is exercised even at these
    # tiny test shapes (inputs this small normally take the jnp.mean fallback).
    out = global_average_pooling_ours_forward(inputs, force_pallas=True)
    outs_t, outs = out[5], out[6]
    jax.block_until_ready(outs)
    jax.block_until_ready(outs_t)

    # Sanity check against plain-JAX reference of the pooling semantics.
    ref = jnp.mean(x, axis=(2, 3))
    ref_t = jnp.mean(x_t, axis=(2, 3))
    assert outs.shape == (N, C) and outs_t.shape == (N, C)
    assert jnp.allclose(outs, ref, atol=1e-5), "mismatch vs reference (outs)"
    assert jnp.allclose(outs_t, ref_t, atol=1e-5), "mismatch vs reference (outs_t)"

    # Default path (tiny-input jnp.mean fallback) must match too.
    out2 = global_average_pooling_ours_forward(inputs)
    assert jnp.allclose(out2[6], ref, atol=1e-5)
    assert jnp.allclose(out2[5], ref_t, atol=1e-5)

    # Pass-throughs preserved.
    assert out[3] == 7 and out[4] is None

    print("KERNEL_OK")
</pallas_src>

<mosaic_0001>
module attributes {stable_mosaic.version = 11 : i64} {
  func.func @kernel(%arg0: i32, %arg1: i32, %arg2: i32, %arg3: memref<2x4x256xf32, #tpu.memory_space<vmem>>, %arg4: memref<2x4x256xf32, #tpu.memory_space<vmem>>, %arg5: memref<2x4xf32, #tpu.memory_space<vmem>>, %arg6: memref<2x4xf32, #tpu.memory_space<vmem>>, %arg7: memref<2x4xf32, #tpu.memory_space<vmem>>, %arg8: memref<2x4xf32, #tpu.memory_space<vmem>>) attributes {dimension_semantics = [#tpu.dimension_semantics<parallel>, #tpu.dimension_semantics<parallel>, #tpu.dimension_semantics<arbitrary>], iteration_bounds = array<i64: 1, 1, 1>, scalar_prefetch = 0 : i64, scratch_operands = 2 : i64, tpu.core_type = #tpu.core_type<tc>, window_params = [{transform_indices = @transform_0, window_bounds = array<i64: 2, 4, 256>}, {transform_indices = @transform_1, window_bounds = array<i64: 2, 4, 256>}, {transform_indices = @transform_2, window_bounds = array<i64: 2, 4>}, {transform_indices = @transform_3, window_bounds = array<i64: 2, 4>}]} {
    %c0_i32 = arith.constant 0 : i32
    %0 = arith.cmpi eq, %arg2, %c0_i32 : i32
    %1 = arith.extui %0 : i1 to i32
    %c0_i32_0 = arith.constant 0 : i32
    %2 = arith.cmpi ne, %1, %c0_i32_0 : i32
    scf.if %2 {
      %cst_17 = arith.constant 0.000000e+00 : f32
      %16 = vector.broadcast %cst_17 : f32 to vector<2x4xf32>
      %c0_18 = arith.constant 0 : index
      %c0_19 = arith.constant 0 : index
      %17 = vector.load %arg7[%c0_18, %c0_19] : memref<2x4xf32, #tpu.memory_space<vmem>>, vector<2x4xf32>
      tpu.vector_store %arg7[%c0_18, %c0_19], %16 {strides = array<i32>} : memref<2x4xf32, #tpu.memory_space<vmem>>, vector<2x4xf32>,
      %cst_20 = arith.constant 0.000000e+00 : f32
      %18 = vector.broadcast %cst_20 : f32 to vector<2x4xf32>
      %c0_21 = arith.constant 0 : index
      %c0_22 = arith.constant 0 : index
      %19 = vector.load %arg8[%c0_21, %c0_22] : memref<2x4xf32, #tpu.memory_space<vmem>>, vector<2x4xf32>
      tpu.vector_store %arg8[%c0_21, %c0_22], %18 {strides = array<i32>} : memref<2x4xf32, #tpu.memory_space<vmem>>, vector<2x4xf32>,
    } else {
    }
    %c0 = arith.constant 0 : index
    %c0_1 = arith.constant 0 : index
    %3 = vector.load %arg7[%c0, %c0_1] : memref<2x4xf32, #tpu.memory_space<vmem>>, vector<2x4xf32>
    %c0_2 = arith.constant 0 : index
    %c0_3 = arith.constant 0 : index
    %c0_4 = arith.constant 0 : index
    %4 = vector.load %arg3[%c0_2, %c0_3, %c0_4] : memref<2x4x256xf32, #tpu.memory_space<vmem>>, vector<2x4x256xf32>
    %cst = arith.constant dense<0.000000e+00> : vector<2x4xf32>
    %5 = vector.multi_reduction <add>, %4, %cst [2] : vector<2x4x256xf32> to vector<2x4xf32>
    %6 = arith.addf %3, %5 : vector<2x4xf32>
    %c0_5 = arith.constant 0 : index
    %c0_6 = arith.constant 0 : index
    %7 = vector.load %arg7[%c0_5, %c0_6] : memref<2x4xf32, #tpu.memory_space<vmem>>, vector<2x4xf32>
    tpu.vector_store %arg7[%c0_5, %c0_6], %6 {strides = array<i32>} : memref<2x4xf32, #tpu.memory_space<vmem>>, vector<2x4xf32>,
    %c0_7 = arith.constant 0 : index
    %c0_8 = arith.constant 0 : index
    %8 = vector.load %arg8[%c0_7, %c0_8] : memref<2x4xf32, #tpu.memory_space<vmem>>, vector<2x4xf32>
    %c0_9 = arith.constant 0 : index
    %c0_10 = arith.constant 0 : index
    %c0_11 = arith.constant 0 : index
    %9 = vector.load %arg4[%c0_9, %c0_10, %c0_11] : memref<2x4x256xf32, #tpu.memory_space<vmem>>, vector<2x4x256xf32>
    %cst_12 = arith.constant dense<0.000000e+00> : vector<2x4xf32>
    %10 = vector.multi_reduction <add>, %9, %cst_12 [2] : vector<2x4x256xf32> to vector<2x4xf32>
    %11 = arith.addf %8, %10 : vector<2x4xf32>
    %c0_13 = arith.constant 0 : index
    %c0_14 = arith.constant 0 : index
    %12 = vector.load %arg8[%c0_13, %c0_14] : memref<2x4xf32, #tpu.memory_space<vmem>>, vector<2x4xf32>
    tpu.vector_store %arg8[%c0_13, %c0_14], %11 {strides = array<i32>} : memref<2x4xf32, #tpu.memory_space<vmem>>, vector<2x4xf32>,
    %c0_i32_15 = arith.constant 0 : i32
    %13 = arith.cmpi eq, %arg2, %c0_i32_15 : i32
    %14 = arith.extui %13 : i1 to i32
    %c0_i32_16 = arith.constant 0 : i32
    %15 = arith.cmpi ne, %14, %c0_i32_16 : i32
    scf.if %15 {
      %c0_17 = arith.constant 0 : index
      %c0_18 = arith.constant 0 : index
      %16 = vector.load %arg7[%c0_17, %c0_18] : memref<2x4xf32, #tpu.memory_space<vmem>>, vector<2x4xf32>
      %cst_19 = arith.constant 3.906250e-03 : f32
      %17 = vector.broadcast %cst_19 : f32 to vector<2x4xf32>
      %18 = arith.mulf %16, %17 : vector<2x4xf32>
      %c0_20 = arith.constant 0 : index
      %c0_21 = arith.constant 0 : index
      %19 = vector.load %arg5[%c0_20, %c0_21] : memref<2x4xf32, #tpu.memory_space<vmem>>, vector<2x4xf32>
      tpu.vector_store %arg5[%c0_20, %c0_21], %18 {strides = array<i32>} : memref<2x4xf32, #tpu.memory_space<vmem>>, vector<2x4xf32>,
      %c0_22 = arith.constant 0 : index
      %c0_23 = arith.constant 0 : index
      %20 = vector.load %arg8[%c0_22, %c0_23] : memref<2x4xf32, #tpu.memory_space<vmem>>, vector<2x4xf32>
      %cst_24 = arith.constant 3.906250e-03 : f32
      %21 = vector.broadcast %cst_24 : f32 to vector<2x4xf32>
      %22 = arith.mulf %20, %21 : vector<2x4xf32>
      %c0_25 = arith.constant 0 : index
      %c0_26 = arith.constant 0 : index
      %23 = vector.load %arg6[%c0_25, %c0_26] : memref<2x4xf32, #tpu.memory_space<vmem>>, vector<2x4xf32>
      tpu.vector_store %arg6[%c0_25, %c0_26], %22 {strides = array<i32>} : memref<2x4xf32, #tpu.memory_space<vmem>>, vector<2x4xf32>,
    } else {
    }
    return
  }
  func.func @transform_0(%arg0: i32, %arg1: i32, %arg2: i32) -> (i32, i32, i32) {
    %c0_i32 = arith.constant 0 : i32
    return %arg0, %arg1, %arg2 : i32, i32, i32
  }
  func.func @transform_1(%arg0: i32, %arg1: i32, %arg2: i32) -> (i32, i32, i32) {
    %c0_i32 = arith.constant 0 : i32
    return %arg0, %arg1, %arg2 : i32, i32, i32
  }
  func.func @transform_2(%arg0: i32, %arg1: i32, %arg2: i32) -> (i32, i32) {
    %c0_i32 = arith.constant 0 : i32
    return %arg0, %arg1 : i32, i32
  }
  func.func @transform_3(%arg0: i32, %arg1: i32, %arg2: i32) -> (i32, i32) {
    %c0_i32 = arith.constant 0 : i32
    return %arg0, %arg1 : i32, i32
  }
}

</mosaic_0001>

<bundles_post_ra>
// kernel: tpu_custom_call.1
= control target key start
LH: loop header
LB: loop body
LE: loop exit
PB: predicated region body
PF: predicated region fallthrough
CT: control target
= control target key end

     0   :  { %9 = vsyncpa [#allocation5], 0  ;;  %s312_s0 = inlined_call_operand.hbm [shape: f32[2,4,256], index: 0, kind: input, shape index: {}]   ;;  %s313_s1 = inlined_call_operand.hbm [shape: f32[2,4,256], index: 1, kind: input, shape index: {}]   ;;  %s314_s2 = inlined_call_operand.hbm [shape: f32[2,4], index: 2, kind: output, shape index: {0}]   ;;  %s315_s3 = inlined_call_operand.hbm [shape: f32[2,4], index: 3, kind: output, shape index: {1}]  }
   0x1   :  { %10 = vsyncpa [#allocation8], 0 }
   0x2   :  { %11 = vsyncpa [#allocation6], 0 }
   0x3   :  { %12 = vsyncpa [#allocation11], 0  ;;  %s259_s12 = smov [#allocation4]  }
   0x4   :  { %s18_s13 = sshll.u32 %s259_s12, 4  ;;  %s19_s13 = int_to_ptr.vmem [resolvable:$true] %s18_s13 }
   0x5   :  { %s179_s14 = scalar_lea.vmem %s19_s13, 256  ;;  %p184_p1 = scmp.lt.s32.totalorder %s19_s13, %s19_s13 }
   0x6   :  { %p180_p0 = scmp.ne.s32.totalorder %s19_s13, %s179_s14  ;;  %p185_p2 = scmp.lt.s32.totalorder %s179_s14, %s179_s14 }
   0x8   :  { %p186_p3 = por %p185_p2, %p184_p1 }
   0xa   :  { %p187_p4 = pnand %p186_p3, %p180_p0 }
   0xc   :  { %190 = shalt.err (!%p187_p4)
}
   0xd   :  { %s260_s15 = smov 128   ;;  %s261_s16 = smov 8  }
   0xe   :  { %24 = dma.hbm_to_vmem [thread:$0]  %s312_s0, 256, %s19_s13, [#allocation5], %s260_s15, %s260_s15, %s261_s16  }
   0xf   :  { %s262_s19 = smov [#allocation7]  }
  0x10   :  { %s30_s20 = sshll.u32 %s262_s19, 4  ;;  %s31_s20 = int_to_ptr.vmem [resolvable:$true] %s30_s20 }
  0x11   :  { %s199_s21 = scalar_lea.vmem %s31_s20, 256  ;;  %p204_p6 = scmp.lt.s32.totalorder %s31_s20, %s31_s20 }
  0x12   :  { %p200_p5 = scmp.ne.s32.totalorder %s31_s20, %s199_s21  ;;  %p205_p7 = scmp.lt.s32.totalorder %s199_s21, %s199_s21 }
  0x14   :  { %p206_p8 = por %p205_p7, %p204_p6 }
  0x16   :  { %p207_p9 = pnand %p206_p8, %p200_p5 }
  0x18   :  { %210 = shalt.err (!%p207_p9)
}
  0x19   :  { %36 = dma.hbm_to_vmem [thread:$0]  %s313_s1, 256, %s31_s20, [#allocation8], %s260_s15, %s260_s15, %s261_s16  }
  0x1a   :  { %251 = dma.done.wait [#allocation5], 256  }
  0x1b   :  { %252 = vsyncadd [#allocation5], 4294967040 }
  0x1c   :  { %253 = dma.done.wait [#allocation8], 256  }
  0x1d   :  { %254 = vsyncadd [#allocation8], 4294967040  ;;  %vm59_vm0 = vcmask 1043456   ;;  %v89_v0 = vld [vmem:[#allocation7] sm:$0xff]  ;;  %v51_v1 = vld [vmem:[#allocation4] sm:$0xff]  ;;  %vm47_vm1 = vcmask 25600   ;;  %v72_v21 = vlaneseq }
  0x1e   :  { %v90_v2 = vld [vmem:[#allocation7 + $0x8] sm:$0xff]  ;;  %v93_v3 = vcombine.high %v89_v0, %v89_v0  ;;  %v97_v4 = vsel %vm59_vm0, %v89_v0, 0.0  ;;  %v55_v5 = vcombine.high %v51_v1, %v51_v1  ;;  %v60_v6 = vsel %vm59_vm0, %v51_v1, 0.0  ;;  %v52_v7 = vld [vmem:[#allocation4 + $0x8] sm:$0xff]  ;;  %s264_s0 = smov [#allocation9]   ;;  %s265_s24 = smov [#allocation10]  }
  0x1f   :  { %v94_v8 = vcombine.high %v90_v2, %v90_v2  ;;  %v56_v9 = vcombine.high %v52_v7, %v52_v7  ;;  %v102_v12 = vsel %vm59_vm0, %v90_v2, 0.0  ;;  %v65_v13 = vsel %vm59_vm0, %v52_v7, 0.0  ;;  %s136_s1 = sshll.u32 %s264_s0, 4  ;;  %s146_s25 = sshll.u32 %s265_s24, 4  ;;  %s137_s1 = int_to_ptr.vmem [resolvable:$true] %s136_s1  ;;  %s147_s25 = int_to_ptr.vmem [resolvable:$true] %s146_s25 }
  0x20   :  { %v98_v10 = vsel %vm59_vm0, %v93_v3, 0.0  ;;  %v61_v11 = vsel %vm59_vm0, %v55_v5, 0.0  ;;  %v263_v20 = vmov 0.0   ;;  %v73_v22 = vand.u32 127, %v72_v21  ;;  %s211_s26 = scalar_lea.vmem %s137_s1, 32  ;;  %p216_p11 = scmp.lt.s32.totalorder %s137_s1, %s137_s1 }
  0x21   :  { %v99_v14 = vadd.f32 %v98_v10, %v97_v4  ;;  %v62_v15 = vadd.f32 %v61_v11, %v60_v6  ;;  %v103_v16 = vsel %vm59_vm0, %v94_v8, 0.0  ;;  %v66_v17 = vsel %vm59_vm0, %v56_v9, 0.0  ;;  %49 = vst.msk [vmem:[#allocation3] sm:$0x3] %vm47_vm1, %v263_v20  ;;  %48 = vst.msk [vmem:[#allocation2] sm:$0x3] %vm47_vm1, %v263_v20  ;;  %p212_p10 = scmp.ne.s32.totalorder %s137_s1, %s211_s26  ;;  %p217_p12 = scmp.lt.s32.totalorder %s211_s26, %s211_s26 }
  0x22   :  { %v104_v18 = vadd.f32 %v103_v16, %v102_v12  ;;  %v67_v19 = vadd.f32 %v66_v17, %v65_v13  ;;  %v75_v23 = vshrl.u32 %v72_v21, 7  ;;  %vm82_vm2 = vcmask 1041409  }
  0x23   :  { %100 = vadd.xlane.f32.xlu1 %v99_v14  ;;  %63 = vadd.xlane.f32.xlu0 %v62_v15  ;;  %p218_p13 = por %p217_p12, %p216_p11 }
  0x24   :  { %v76_v26 = vsub.s32 %v73_v22, %v75_v23 }
  0x25   :  { %p219_p0 = pnand %p218_p13, %p212_p10 }
  0x27   :  { %105 = vadd.xlane.f32.xlu1 %v104_v18  ;;  %68 = vadd.xlane.f32.xlu0 %v67_v19 }
  0x28   :  { %v88_v31 = vld [vmem:[#allocation3] sm:$0x3]  ;;  %v50_v33 = vld [vmem:[#allocation2] sm:$0x3] }
  0xac   :  { %v101_v24 = vpop.xlane.xlu1 %100  ;;  %v64_v25 = vpop.xlane.xlu0 %63 }
  0xad   :  { %v112_v29 = vrot.slane %v101_v24, %v76_v26  ;;  %v77_v30 = vrot.slane %v64_v25, %v76_v26 }
  0xb0   :  { %v106_v27 = vpop.xlane.xlu1 %105  ;;  %v69_v28 = vpop.xlane.xlu0 %68 }
  0xb1   :  { %v116_v32 = vrot.slane %v106_v27, %v76_v26  ;;  %v81_v34 = vrot.slane %v69_v28, %v76_v26 }
  0xb3   :  { %v117_v35 = vsel %vm82_vm2, %v116_v32, %v112_v29  ;;  %v83_v36 = vsel %vm82_vm2, %v81_v34, %v77_v30 }
  0xb4   :  { %v119_v37 = vadd.f32 %v117_v35, %v88_v31  ;;  %v85_v38 = vadd.f32 %v83_v36, %v50_v33 }
  0xb6   :  { %120 = vst.msk [vmem:[#allocation3] sm:$0x3] %vm47_vm1, %v119_v37  ;;  %87 = vst.msk [vmem:[#allocation2] sm:$0x3] %vm47_vm1, %v85_v38 }
  0xbd   :  { %v124_v39 = vld [vmem:[#allocation2] sm:$0x3]  ;;  %v127_v40 = vld [vmem:[#allocation3] sm:$0x3] }
  0xbe   :  { %v125_v41 = vmul.f32 0.00390625, %v124_v39  ;;  %v128_v42 = vmul.f32 0.00390625, %v127_v40 }
  0xc0   :  { %126 = vst.msk [vmem:[#allocation9] sm:$0x3] %vm47_vm1, %v125_v41  ;;  %129 = vst.msk [vmem:[#allocation10] sm:$0x3] %vm47_vm1, %v128_v42 }
  0xc1   :  { %222 = shalt.err (!%p219_p0)
}
  0xc2   :  { %139 = dma.vmem_to_hbm [thread:$0]  %s137_s1, 32, %s314_s2, [#allocation6]  }
  0xc3   :  { %s231_s29 = scalar_lea.vmem %s147_s25, 32  ;;  %p236_p2 = scmp.lt.s32.totalorder %s147_s25, %s147_s25 }
  0xc4   :  { %p232_p1 = scmp.ne.s32.totalorder %s147_s25, %s231_s29  ;;  %p237_p3 = scmp.lt.s32.totalorder %s231_s29, %s231_s29 }
  0xc6   :  { %p238_p4 = por %p237_p3, %p236_p2 }
  0xc8   :  { %p239_p5 = pnand %p238_p4, %p232_p1 }
  0xca   :  { %242 = shalt.err (!%p239_p5)
}
  0xcb   :  { %149 = dma.vmem_to_hbm [thread:$0]  %s147_s25, 32, %s315_s3, [#allocation11]  }
  0xcc   :  { %255 = dma.done.wait [#allocation6], 32  }
  0xcd   :  { %256 = vsyncadd [#allocation6], 4294967264 }
  0xce   :  { %257 = dma.done.wait [#allocation11], 32  }
  0xcf   :  { %258 = vsyncadd [#allocation11], 4294967264 }
  0xd0   :  { %156 = vsyncpa [#allocation5], 1 }
  0xd1   :  { %157 = vsyncpa [#allocation8], 1 }
  0xd2   :  { %158 = vsyncpa [#allocation6], 1 }
  0xd3   :  { %159 = vsyncpa [#allocation11], 1 }

</bundles_post_ra>
